<compile_context>
chip_gen: v7x
topology: tpu7x:2x2x1
jax: 0.10.0
libtpu: 0.0.40
codegen_flags: <defaults>
</compile_context>

<pallas_src>
import functools

import jax
import jax.numpy as jnp
from jax import lax
from jax.experimental import pallas as pl
from jax.experimental.pallas import tpu as pltpu

_BIG = 3.0e38


def _round_up(x, m):
    return (x + m - 1) // m * m


def _device_budgets():
    """(resident_budget_bytes, vmem_limit_bytes) chosen per TPU generation."""
    try:
        kind = jax.devices()[0].device_kind.lower()
    except Exception:  # no devices / exotic backend -> conservative defaults
        kind = ""
    if "v5 lite" in kind or "v5e" in kind or "v5lite" in kind:
        return 40 << 20, 96 << 20      # 128 MiB physical, 1 vst slot
    if "v6" in kind:
        return 64 << 20, 100 << 20     # 128 MiB physical
    if "7" in kind:
        return 24 << 20, 48 << 20      # v7x: 64 MiB physical per TensorCore
    return 24 << 20, 64 << 20          # unknown / v4 / v5p: stay conservative


def _chamfer_pair_kernel(ii_ref, jj_ref, lhs_ref, rhs_ref, o_ref, cmin_ref, *,
                         npts, tile, n_chunks, lhs_is_whole, rhs_is_whole):
    p = pl.program_id(0)
    lhs_row = ii_ref[p] if lhs_is_whole else 0
    rhs_row = jj_ref[p] if rhs_is_whole else 0

    # Column-min accumulator (one slot per column chunk), reset once per pair.
    cmin_ref[...] = jnp.full(cmin_ref.shape, _BIG, jnp.float32)

    # Hoisted loop-invariant iota (JAX does not CSE broadcast_in_dim).
    row_iota = lax.broadcasted_iota(jnp.int32, (tile, 1), 0)

    def row_body(r, acc):
        row_start = pl.multiple_of(r * tile, 128)
        lhs_c = lhs_ref[lhs_row, :, pl.ds(row_start, tile)]          # (8, tile)

        def col_body(c, rmin):
            col_start = pl.multiple_of(c * tile, 128)
            rhs_c = rhs_ref[rhs_row, :, pl.ds(col_start, tile)]      # (8, tile)
            # One MXU pass: |a|^2 + |b|^2 - 2 a.b for the whole tile, full f32.
            d = lax.dot_general(
                lhs_c, rhs_c,
                dimension_numbers=(((0,), (0,)), ((), ())),
                preferred_element_type=jnp.float32,
                precision=lax.Precision.HIGHEST)                     # (tile, tile)
            # Lane-dense running row-min: pure VPU minimums over 128-wide
            # sub-columns; the single cross-lane reduce happens after the loop.
            for s in range(tile // 128):
                rmin = jnp.minimum(rmin, d[:, s * 128:(s + 1) * 128])
            # Column partial mins persist across row chunks in the scratch.
            cpart = jnp.min(d, axis=0, keepdims=True)                # (1, tile)
            cmin_ref[c] = jnp.minimum(cmin_ref[c], cpart)
            return rmin

        rmin0 = jnp.full((tile, 128), _BIG, jnp.float32)
        rmin = lax.fori_loop(0, n_chunks, col_body, rmin0)
        # Single XLU reduce per row chunk; clamp the reduced mins (not the tile).
        rmin = jnp.maximum(jnp.min(rmin, axis=1, keepdims=True), 0.0)  # (tile,1)
        # Padded rows replicate a real point (edge mode) -> mins are genuine;
        # they only have to be excluded from the mean.
        row_valid = ((row_start + row_iota) < npts).astype(jnp.float32)
        return acc + jnp.sum(rmin * row_valid)

    row_sum = lax.fori_loop(0, n_chunks, row_body, jnp.float32(0.0))

    # Finalize column mins once per pair: clamp, mask padded columns, sum.
    cmin = jnp.maximum(cmin_ref[...], 0.0)                     # (n_chunks,1,tile)
    chunk_idx = lax.broadcasted_iota(jnp.int32, cmin.shape, 0)
    lane_idx = lax.broadcasted_iota(jnp.int32, cmin.shape, 2)
    col_valid = (chunk_idx * tile + lane_idx) < npts
    col_sum = jnp.sum(jnp.where(col_valid, cmin, 0.0))

    val = (row_sum + col_sum) * (1.0 / npts)
    # Lane-dense unmasked store of the per-pair scalar.
    o_ref[...] = jnp.full(o_ref.shape, val, jnp.float32)


def chamfer_3d_dist(input1, input2, *, tile=256):
    """Pallas equivalent of chamfer_3DDist.forward.

    input1, input2: (K, 1, N, 3) arrays.  Returns a (K, K) float32 symmetric
    matrix with a zero diagonal.
    """
    inp = (input1 + input2).astype(jnp.float32)              # (K, B, N, 3)
    K, B, N, C = inp.shape
    assert C == 3
    # The original module assigns a length-B vector to a scalar entry => B == 1.
    npts = B * N
    if K == 1:
        return jnp.zeros((1, 1), jnp.float32)

    pts = inp.reshape(K, npts, 3)
    # Distances are translation invariant; removing a common offset improves the
    # conditioning of the |a|^2 + |b|^2 - 2 a.b expansion.
    pts = pts - jnp.mean(pts, axis=(0, 1), keepdims=True)

    coords = jnp.transpose(pts, (0, 2, 1))                    # (K, 3, npts)
    sq = jnp.sum(pts * pts, axis=-1)[:, None, :]              # (K, 1, npts)
    ones = jnp.ones((K, 1, npts), jnp.float32)
    zeros = jnp.zeros((K, 3, npts), jnp.float32)
    lhs_aug = jnp.concatenate([-2.0 * coords, sq, ones, zeros], axis=1)  # (K,8,P)
    rhs_aug = jnp.concatenate([coords, ones, sq, zeros], axis=1)         # (K,8,P)

    # Lane-aligned tiling of the point axis; padded points replicate a real
    # point so they never change a min and are masked out of the means.
    tile = _round_up(min(tile, _round_up(npts, 128)), 128)
    padded = _round_up(npts, tile)
    if padded != npts:
        pad = ((0, 0), (0, 0), (0, padded - npts))
        lhs_aug = jnp.pad(lhs_aug, pad, mode="edge")
        rhs_aug = jnp.pad(rhs_aug, pad, mode="edge")
    n_chunks = padded // tile

    # Upper-triangle pairs, j-major: a streamed rhs block index is then
    # non-decreasing so its DMA is skipped for consecutive equal j.
    pairs = [(i, j) for j in range(1, K) for i in range(j)]
    num_pairs = len(pairs)
    ii = jnp.asarray([p[0] for p in pairs], dtype=jnp.int32)
    jj = jnp.asarray([p[1] for p in pairs], dtype=jnp.int32)

    # Per-generation VMEM budgeting for residency of the cloud arrays.
    resident_budget, vmem_limit = _device_budgets()
    cloud_bytes = K * 8 * padded * 4            # one whole augmented array
    stream_bytes = 2 * 8 * padded * 4           # one double-buffered streamed block
    scratch_bytes = n_chunks * 8 * tile * 4     # col-min scratch (sublane padded)
    temp_bytes = 8 * tile * tile * 4 + (2 << 20)  # d tile, row-min carry, slack
    fixed = scratch_bytes + temp_bytes
    # Resident blocks are conservatively counted twice (default double
    # buffering; the DMA itself only runs once since their index is constant).
    # TODO(synk): pipeline_mode=pl.Buffered(1) would halve the resident
    # footprint; not used here to keep the lowering path well-trodden.
    both_resident = 2 * (2 * cloud_bytes) + fixed <= resident_budget
    lhs_resident = both_resident or (
        2 * cloud_bytes + stream_bytes + fixed <= resident_budget)
    rhs_resident = both_resident

    lhs_spec = (pl.BlockSpec((K, 8, padded), lambda p, ii, jj: (0, 0, 0))
                if lhs_resident else
                pl.BlockSpec((1, 8, padded), lambda p, ii, jj: (ii[p], 0, 0)))
    rhs_spec = (pl.BlockSpec((K, 8, padded), lambda p, ii, jj: (0, 0, 0))
                if rhs_resident else
                pl.BlockSpec((1, 8, padded), lambda p, ii, jj: (jj[p], 0, 0)))

    kernel = functools.partial(
        _chamfer_pair_kernel, npts=npts, tile=tile, n_chunks=n_chunks,
        lhs_is_whole=lhs_resident, rhs_is_whole=rhs_resident)

    out3 = pl.pallas_call(
        kernel,
        out_shape=jax.ShapeDtypeStruct((num_pairs, 1, 128), jnp.float32),
        grid_spec=pltpu.PrefetchScalarGridSpec(
            num_scalar_prefetch=2,
            grid=(num_pairs,),
            in_specs=[lhs_spec, rhs_spec],
            out_specs=pl.BlockSpec((1, 1, 128), lambda p, ii, jj: (p, 0, 0)),
            scratch_shapes=[pltpu.VMEM((n_chunks, 1, tile), jnp.float32)],
        ),
        compiler_params=pltpu.CompilerParams(
            dimension_semantics=("parallel",),
            vmem_limit_bytes=vmem_limit),
    )(ii, jj, lhs_aug, rhs_aug)

    vals = out3[:, 0, 0]                                      # (num_pairs,)
    out = jnp.zeros((K, K), jnp.float32).at[ii, jj].set(vals)
    # Lower triangle mirrors the upper triangle; diagonal stays exactly zero.
    return out + out.T


def _reference(input1, input2):
    """Plain-JAX reference mirroring the PyTorch double loop (direct diffs)."""
    inp = (input1 + input2).astype(jnp.float32)
    K, B, N, _ = inp.shape
    clouds = inp.reshape(K, B * N, 3)
    out = jnp.zeros((K, K), jnp.float32)
    for i in range(K):
        for j in range(K):
            if i < j:
                diff = clouds[i][:, None, :] - clouds[j][None, :, :]
                d = jnp.sum(diff * diff, axis=-1)
                v = jnp.mean(jnp.min(d, axis=1)) + jnp.mean(jnp.min(d, axis=0))
                out = out.at[i, j].set(v)
                out = out.at[j, i].set(v)
    return out


if __name__ == "__main__":
    key = jax.random.PRNGKey(0)
    k1, k2 = jax.random.split(key)
    K, N = 4, 16
    # Module implies (K, 1, N, 3): K point clouds, batch=1, N points, xyz.
    input1 = jax.random.normal(k1, (K, 1, N, 3), dtype=jnp.float32)
    input2 = jax.random.normal(k2, (K, 1, N, 3), dtype=jnp.float32)

    out = jax.block_until_ready(chamfer_3d_dist(input1, input2))
    ref = _reference(input1, input2)

    assert out.shape == (K, K)
    assert jnp.allclose(out, ref, atol=2e-3, rtol=2e-3), (out, ref)

    # TODO(synk): the backward pass (chamfer_3D.backward) and the idx1/idx2
    # argmin outputs are not part of this module's forward output and are not
    # produced by this kernel.
    print("KERNEL_OK")
</pallas_src>

<mosaic_0001>
module attributes {stable_mosaic.version = 11 : i64} {
  func.func @_chamfer_pair_kernel(%arg0: i32, %arg1: memref<6xi32, #tpu.memory_space<smem>>, %arg2: memref<6xi32, #tpu.memory_space<smem>>, %arg3: memref<4x8x128xf32, #tpu.memory_space<vmem>>, %arg4: memref<4x8x128xf32, #tpu.memory_space<vmem>>, %arg5: memref<1x1x128xf32, #tpu.memory_space<vmem>>, %arg6: memref<1x1x128xf32, #tpu.memory_space<vmem>>) attributes {dimension_semantics = [#tpu.dimension_semantics<parallel>], iteration_bounds = array<i64: 6>, scalar_prefetch = 2 : i64, scratch_operands = 1 : i64, tpu.core_type = #tpu.core_type<tc>, window_params = [{pipeline_mode = #tpu.pipeline_mode<synchronous>, transform_indices = @transform_0, window_bounds = array<i64: 4, 8, 128>}, {pipeline_mode = #tpu.pipeline_mode<synchronous>, transform_indices = @transform_1, window_bounds = array<i64: 4, 8, 128>}, {transform_indices = @transform_2, window_bounds = array<i64: 1, 1, 128>}]} {
    %0 = arith.index_cast %arg0 : i32 to index
    %1 = memref.load %arg1[%0] : memref<6xi32, #tpu.memory_space<smem>>
    %2 = arith.index_cast %arg0 : i32 to index
    %3 = memref.load %arg2[%2] : memref<6xi32, #tpu.memory_space<smem>>
    %cst = arith.constant 3.000000e+38 : f32
    %4 = vector.broadcast %cst : f32 to vector<1x1x128xf32>
    %c0 = arith.constant 0 : index
    %c0_0 = arith.constant 0 : index
    %c0_1 = arith.constant 0 : index
    %5 = vector.load %arg6[%c0, %c0_0, %c0_1] : memref<1x1x128xf32, #tpu.memory_space<vmem>>, vector<1x1x128xf32>
    tpu.vector_store %arg6[%c0, %c0_0, %c0_1], %4 {strides = array<i32>} : memref<1x1x128xf32, #tpu.memory_space<vmem>>, vector<1x1x128xf32>,
    %6 = tpu.iota {dimensions = array<i32: 0>} : vector<128x1xi32>
    %cst_2 = arith.constant 0.000000e+00 : f32
    %c0_i32 = arith.constant 0 : i32
    %c128_i32 = arith.constant 128 : i32
    %7 = arith.muli %c0_i32, %c128_i32 : i32
    %8 = tpu.assume_multiple %7, 128 : i32
    %9 = arith.index_cast %1 : i32 to index
    %c0_3 = arith.constant 0 : index
    %10 = arith.index_cast %8 : i32 to index
    %11 = vector.load %arg3[%9, %c0_3, %10] : memref<4x8x128xf32, #tpu.memory_space<vmem>>, vector<1x8x128xf32>
    %12 = vector.shape_cast %11 : vector<1x8x128xf32> to vector<8x128xf32>
    %cst_4 = arith.constant 3.000000e+38 : f32
    %13 = vector.broadcast %cst_4 : f32 to vector<128x128xf32>
    %c0_i32_5 = arith.constant 0 : i32
    %c128_i32_6 = arith.constant 128 : i32
    %14 = arith.muli %c0_i32_5, %c128_i32_6 : i32
    %15 = tpu.assume_multiple %14, 128 : i32
    %16 = arith.index_cast %3 : i32 to index
    %c0_7 = arith.constant 0 : index
    %17 = arith.index_cast %15 : i32 to index
    %18 = vector.load %arg4[%16, %c0_7, %17] : memref<4x8x128xf32, #tpu.memory_space<vmem>>, vector<1x8x128xf32>
    %19 = vector.shape_cast %18 : vector<1x8x128xf32> to vector<8x128xf32>
    %cst_8 = arith.constant dense<0.000000e+00> : vector<128x128xf32>
    %20 = tpu.matmul %12, %19, %cst_8 {dimension_numbers = #tpu.dot_dimension_numbers<[0], [0], [1], [1], [0, 1, 1, 1], [], []>, precision = #tpu.contract_precision<fp32>} : vector<8x128xf32>, vector<8x128xf32>, vector<128x128xf32> -> vector<128x128xf32>
    %21 = arith.minimumf %13, %20 : vector<128x128xf32>
    %cst_9 = arith.constant dense<0x7F800000> : vector<128xf32>
    %22 = vector.multi_reduction <minimumf>, %20, %cst_9 [0] : vector<128x128xf32> to vector<128xf32>
    %23 = vector.shape_cast %22 : vector<128xf32> to vector<1x128xf32>
    %24 = arith.index_cast %c0_i32_5 : i32 to index
    %c0_10 = arith.constant 0 : index
    %c0_11 = arith.constant 0 : index
    %25 = vector.load %arg6[%24, %c0_10, %c0_11] : memref<1x1x128xf32, #tpu.memory_space<vmem>>, vector<1x1x128xf32>
    %26 = vector.shape_cast %25 : vector<1x1x128xf32> to vector<1x128xf32>
    %27 = arith.minimumf %26, %23 : vector<1x128xf32>
    %28 = arith.index_cast %c0_i32_5 : i32 to index
    %c0_12 = arith.constant 0 : index
    %c0_13 = arith.constant 0 : index
    %29 = vector.load %arg6[%28, %c0_12, %c0_13] : memref<1x1x128xf32, #tpu.memory_space<vmem>>, vector<1x1x128xf32>
    %30 = vector.shape_cast %29 : vector<1x1x128xf32> to vector<1x128xf32>
    %31 = vector.shape_cast %27 : vector<1x128xf32> to vector<1x1x128xf32>
    tpu.vector_store %arg6[%28, %c0_12, %c0_13], %31 {strides = array<i32>} : memref<1x1x128xf32, #tpu.memory_space<vmem>>, vector<1x1x128xf32>,
    %c1_i32 = arith.constant 1 : i32
    %cst_14 = arith.constant dense<0x7F800000> : vector<128xf32>
    %32 = vector.multi_reduction <minimumf>, %21, %cst_14 [1] : vector<128x128xf32> to vector<128xf32>
    %33 = vector.shape_cast %32 : vector<128xf32> to vector<128x1xf32>
    %cst_15 = arith.constant 0.000000e+00 : f32
    %34 = vector.broadcast %cst_15 : f32 to vector<128x1xf32>
    %35 = arith.maximumf %33, %34 : vector<128x1xf32>
    %36 = vector.broadcast %8 : i32 to vector<128x1xi32>
    %37 = arith.addi %36, %6 : vector<128x1xi32>
    %c16_i32 = arith.constant 16 : i32
    %38 = vector.broadcast %c16_i32 : i32 to vector<128x1xi32>
    %39 = arith.cmpi slt, %37, %38 : vector<128x1xi32>
    %40 = arith.extui %39 : vector<128x1xi1> to vector<128x1xi32>
    %41 = arith.sitofp %40 : vector<128x1xi32> to vector<128x1xf32>
    %42 = arith.mulf %35, %41 : vector<128x1xf32>
    %43 = vector.shape_cast %42 : vector<128x1xf32> to vector<1x128x1xf32>
    %cst_16 = arith.constant dense<0.000000e+00> : vector<1xf32>
    %44 = vector.multi_reduction <add>, %43, %cst_16 [1, 2] : vector<1x128x1xf32> to vector<1xf32>
    %45 = vector.shape_cast %44 : vector<1xf32> to vector<1x1x1xf32>
    %46 = vector.extract %45[0, 0, 0] : f32 from vector<1x1x1xf32>
    %47 = arith.addf %cst_2, %46 : f32
    %c1_i32_17 = arith.constant 1 : i32
    %c0_18 = arith.constant 0 : index
    %c0_19 = arith.constant 0 : index
    %c0_20 = arith.constant 0 : index
    %48 = vector.load %arg6[%c0_18, %c0_19, %c0_20] : memref<1x1x128xf32, #tpu.memory_space<vmem>>, vector<1x1x128xf32>
    %cst_21 = arith.constant 0.000000e+00 : f32
    %49 = vector.broadcast %cst_21 : f32 to vector<1x1x128xf32>
    %50 = arith.maximumf %48, %49 : vector<1x1x128xf32>
    %51 = tpu.iota {dimensions = array<i32: 0>} : vector<1x1x128xi32>
    %52 = tpu.iota {dimensions = array<i32: 2>} : vector<1x1x128xi32>
    %c128_i32_22 = arith.constant 128 : i32
    %53 = vector.broadcast %c128_i32_22 : i32 to vector<1x1x128xi32>
    %54 = arith.muli %51, %53 : vector<1x1x128xi32>
    %55 = arith.addi %54, %52 : vector<1x1x128xi32>
    %c16_i32_23 = arith.constant 16 : i32
    %56 = vector.broadcast %c16_i32_23 : i32 to vector<1x1x128xi32>
    %57 = arith.cmpi slt, %55, %56 : vector<1x1x128xi32>
    %cst_24 = arith.constant 0.000000e+00 : f32
    %58 = vector.broadcast %cst_24 : f32 to vector<1x1x128xf32>
    %59 = arith.select %57, %50, %58 : vector<1x1x128xi1>, vector<1x1x128xf32>
    %60 = vector.shape_cast %59 : vector<1x1x128xf32> to vector<1x1x1x128xf32>
    %cst_25 = arith.constant dense<0.000000e+00> : vector<1xf32>
    %61 = vector.multi_reduction <add>, %60, %cst_25 [1, 2, 3] : vector<1x1x1x128xf32> to vector<1xf32>
    %62 = vector.shape_cast %61 : vector<1xf32> to vector<1x1x1x1xf32>
    %63 = vector.extract %62[0, 0, 0, 0] : f32 from vector<1x1x1x1xf32>
    %64 = arith.addf %47, %63 : f32
    %cst_26 = arith.constant 6.250000e-02 : f32
    %65 = arith.mulf %64, %cst_26 : f32
    %66 = vector.broadcast %65 : f32 to vector<1x1x128xf32>
    %c0_27 = arith.constant 0 : index
    %c0_28 = arith.constant 0 : index
    %c0_29 = arith.constant 0 : index
    %67 = vector.load %arg5[%c0_27, %c0_28, %c0_29] : memref<1x1x128xf32, #tpu.memory_space<vmem>>, vector<1x1x128xf32>
    tpu.vector_store %arg5[%c0_27, %c0_28, %c0_29], %66 {strides = array<i32>} : memref<1x1x128xf32, #tpu.memory_space<vmem>>, vector<1x1x128xf32>,
    return
  }
  func.func @transform_0(%arg0: i32, %arg1: memref<6xi32, #tpu.memory_space<smem>>, %arg2: memref<6xi32, #tpu.memory_space<smem>>) -> (i32, i32, i32) {
    %c0_i32 = arith.constant 0 : i32
    %c0_i32_0 = arith.constant 0 : i32
    %c0_i32_1 = arith.constant 0 : i32
    %c0_i32_2 = arith.constant 0 : i32
    return %c0_i32, %c0_i32_0, %c0_i32_1 : i32, i32, i32
  }
  func.func @transform_1(%arg0: i32, %arg1: memref<6xi32, #tpu.memory_space<smem>>, %arg2: memref<6xi32, #tpu.memory_space<smem>>) -> (i32, i32, i32) {
    %c0_i32 = arith.constant 0 : i32
    %c0_i32_0 = arith.constant 0 : i32
    %c0_i32_1 = arith.constant 0 : i32
    %c0_i32_2 = arith.constant 0 : i32
    return %c0_i32, %c0_i32_0, %c0_i32_1 : i32, i32, i32
  }
  func.func @transform_2(%arg0: i32, %arg1: memref<6xi32, #tpu.memory_space<smem>>, %arg2: memref<6xi32, #tpu.memory_space<smem>>) -> (i32, i32, i32) {
    %c0_i32 = arith.constant 0 : i32
    %c0_i32_0 = arith.constant 0 : i32
    %c0_i32_1 = arith.constant 0 : i32
    return %arg0, %c0_i32, %c0_i32_0 : i32, i32, i32
  }
}

</mosaic_0001>

<bundles_post_ra>
// kernel: tpu_custom_call.1
= control target key start
LH: loop header
LB: loop body
LE: loop exit
PB: predicated region body
PF: predicated region fallthrough
CT: control target
= control target key end

     0   :  { %s2692_s0 = inlined_call_operand.hbm [shape: s32[6], index: 0, kind: input, shape index: {}]   ;;  %s2693_s2 = inlined_call_operand.hbm [shape: f32[4,8,128], index: 2, kind: input, shape index: {}]   ;;  %s2694_s3 = inlined_call_operand.hbm [shape: f32[4,8,128], index: 3, kind: input, shape index: {}]   ;;  %s2695_s4 = inlined_call_operand.hbm [shape: f32[6,1,128], index: 4, kind: output, shape index: {}]   ;;  %s2696_s1 = inlined_call_operand.hbm [shape: s32[6], index: 1, kind: input, shape index: {}]  }
   0x1   :  { %s2093_s17 = scalar_lea.hbm %s2692_s0, 16 }
   0x2   :  { %p2094_p0 = scmp.ne.s32.totalorder %s2692_s0, %s2093_s17  ;;  %p2097_p1 = scmp.lt.u32.totalorder %s2093_s17, %s2692_s0 }
   0x4   :  { %p2099_p2 = pnand %p2097_p1, %p2094_p0 }
   0x6   :  { %2102 = shalt.err (!%p2099_p2)  }
   0x7   :  { %s2243_s22 = smov [#allocation4]   ;;  %s2103_s27 = scalar_lea.hbm %s2696_s1, 16 }
   0x8   :  { %10 = dma.hbm_to_smem %s2692_s0, 16, %s2243_s22, [#allocation3] }
   0x9   :  { %p2104_p3 = scmp.ne.s32.totalorder %s2696_s1, %s2103_s27  ;;  %p2107_p4 = scmp.lt.u32.totalorder %s2103_s27, %s2696_s1 }
   0xb   :  { %p2109_p5 = pnand %p2107_p4, %p2104_p3 }
   0xd   :  { %2112 = shalt.err (!%p2109_p5)  }
   0xe   :  { %s2244_s6 = smov [#allocation5]  }
   0xf   :  { %12 = dma.hbm_to_smem %s2696_s1, 16, %s2244_s6, [#allocation3] }
  0x10   :  { %2213 = dma.done.wait [#allocation3], 32 }
  0x11   :  { %2214 = vsyncadd [#allocation3], 4294967264 }
  0x12   :  { %14 = sfence }
  0x13   :  { %15 = vsyncpa [#allocation7], 0 }
  0x14   :  { %16 = vsyncpa [#allocation10], 0 }
  0x15   :  { %17 = vsyncpa [#allocation8], 0 }
  0x16   :  { %19 = vsyncpa [#allocation8 + $0x1], 0  ;;  %s2300_s0 = smov 0   ;;  %s2302_s9 = smov 0  }
  0x17   :  { %s2304_s10 = smov 0   ;;  %s2306_s11 = smov 0  }
  0x18 LB: > { %s2321_s1 = sadd.s32 4294967295, %s2241_s11   ;;  %s1673_s12 = sadd.s32 4294967294, %s2241_s11   ;;  %s2241_s11 = sphi %s2306_s11, %s2714_s11   ;;  %s2237_s10 = sphi %s2304_s10, %s2713_s10   ;;  %s2233_s9 = sphi %s2302_s9, %s2712_s9   ;;  %s2229_s0 = sphi %s2300_s0, %s2711_s0  }
  0x19   : > { %s2325_s13 = sadd.s32 1, %s2241_s11   ;;  %s74_s14 = sadd.s32 1, %s2237_s10 }
  0x1a   : > { %s71_s15 = ssub.s32 %s2241_s11, %s2325_s13  ;;  %p84_p6 = scmp.ne.s32.totalorder %s2237_s10, %s2233_s9 }
  0x1b   : > { %p72_p7 = scmp.eq.s32.totalorder %s71_s15, 0  ;;  %p85_p8 = scmp.eq.s32.totalorder %s2321_s1, 5 }
  0x1c   : > { %p90_p9 = scmp.ne.s32.totalorder %s2233_s9, %s2229_s0  ;;  %p91_p10 = scmp.eq.s32.totalorder %s1673_s12, 5 }
  0x1d   : > { %s2336_s16 = scalar_select %p72_p7, %s2237_s10, %s74_s14  }
  0x1e   : > { %p2338_p11 = por %p85_p8, %p84_p6  ;;  %p2342_p12 = por %p91_p10, %p90_p9 }
  0x1f   : > { %p1674_p13 = scmp.ge.s32.totalorder %s2241_s11, 1  ;;  %p98_p0 = scmp.lt.s32.totalorder %s2241_s11, 7 }
  0x20   : > { %s2700_s17 = scalar_select %p2338_p11, 1, 0 }
  0x21   : > { %s2701_s18 = scalar_select %p2342_p12, 1, 0 }
  0x22   : > { %p2697_p1 = scmp.eq.s32.totalorder %s2321_s1, 0  ;;  %p2349_p2 = pnand %p1674_p13, %p98_p0 }
  0x23   : > { %s2245_s20 = smov [#allocation6]   ;;  %s2246_s23 = smov [#allocation9]  }
  0x24   : > { %s2702_s19 = scalar_select %p2349_p2, 1, 0 }
  0x25   : > { %s110_s21 = sshll.u32 %s2245_s20, 4  ;;  %p2037_p3 = pneg %p2349_p2  ;;  %s111_s21 = int_to_ptr.vmem [resolvable:$true] %s110_s21 }
  0x26   : > { %s123_s24 = sshll.u32 %s2246_s23, 4  ;;  %s2113_s27 = scalar_lea.hbm %s2693_s2, 512  ;;  %s2361_s24 = int_to_ptr.vmem [resolvable:$true] %s123_s24 }
  0x27   : > { %p2357_p4 = pnand %p2697_p1, %p2037_p3  ;;  %p2114_p5 = scmp.ne.s32.totalorder %s2693_s2, %s2113_s27 }
  0x28   : > { %p2120_p9 = scmp.lt.u32.totalorder %s2113_s27, %s2693_s2 }
  0x29   : > { %p2115_p6 = pneg %p2357_p4 }
  0x2b   : > { %p2116_p7 = pnand %p2115_p6, %p2114_p5 }
  0x2d   : > { %p2117_p8 = pneg %p2116_p7 }
  0x2f   : > { %p2122_p10 = pnand %p2120_p9, %p2117_p8 }
  0x31   : > { %2125 = shalt.err (!%p2122_p10)
}
  0x32   : > { %s2126_s6 = scalar_lea.vmem %s111_s21, 512  ;;  %p2134_p1 = scmp.lt.s32.totalorder %s111_s21, %s111_s21 }
  0x33   : > { %p2127_p13 = scmp.ne.s32.totalorder %s111_s21, %s2126_s6  ;;  %p2135_p12 = scmp.lt.s32.totalorder %s2126_s6, %s2126_s6 }
  0x35   : > { %p2129_p0 = pnand %p2127_p13, %p2115_p6  ;;  %p2136_p11 = por %p2135_p12, %p2134_p1 }
  0x37   : > { %p2130_p3 = pneg %p2129_p0 }
  0x39   : > { %p2137_p2 = pnand %p2136_p11, %p2130_p3 }
  0x3b   : > { %2140 = shalt.err (!%p2137_p2)
}
  0x3c   : > { %s2247_s7 = smov 128   ;;  %s2248_s8 = smov 8  }
  0x3d   : > { %2040 = dma.hbm_to_vmem [thread:$0]  (!%p2357_p4), %s2693_s2, 512, %s111_s21, [#allocation7], %s2247_s7, %s2247_s7, %s2248_s8  }
  0x3e   : > { %s2141_s23 = scalar_lea.hbm %s2694_s3, 512 }
  0x3f   : > { %p2142_p5 = scmp.ne.s32.totalorder %s2694_s3, %s2141_s23  ;;  %p2148_p1 = scmp.lt.u32.totalorder %s2141_s23, %s2694_s3 }
  0x41   : > { %p2144_p11 = pnand %p2142_p5, %p2115_p6 }
  0x43   : > { %p2145_p12 = pneg %p2144_p11 }
  0x45   : > { %p2150_p2 = pnand %p2148_p1, %p2145_p12 }
  0x47   : > { %2153 = shalt.err (!%p2150_p2)
}
  0x48   : > { %s2154_s21 = scalar_lea.vmem %s2361_s24, 512  ;;  %p2162_p10 = scmp.lt.s32.totalorder %s2361_s24, %s2361_s24 }
  0x49   : > { %p2155_p7 = scmp.ne.s32.totalorder %s2361_s24, %s2154_s21  ;;  %p2163_p13 = scmp.lt.s32.totalorder %s2154_s21, %s2154_s21 }
  0x4b   : > { %p2157_p8 = pnand %p2155_p7, %p2115_p6  ;;  %p2164_p0 = por %p2163_p13, %p2162_p10 }
  0x4d   : > { %p2158_p9 = pneg %p2157_p8 }
  0x4f   : > { %p2165_p3 = pnand %p2164_p0, %p2158_p9 }
  0x51   : > { %2168 = shalt.err (!%p2165_p3)
}
  0x52   : > { %2043 = dma.hbm_to_vmem [thread:$0]  (!%p2357_p4), %s2694_s3, 512, %s2361_s24, [#allocation10], %s2247_s7, %s2247_s7, %s2248_s8  }
  0x53   : > { %p2704_p5 = scmp.ne.s32.totalorder %s2702_s19, 0 }
  0x54   : > { %p2705_p11 = scmp.eq.s32.totalorder (!%p2704_p5), %s2321_s1, 0 }
  0x55   : > { %139 = sbr.rel (%p2704_p5) target bundleno = 990 (0x3de), region = 28 }
  0x5c   : > { %2216 = dma.done.wait (%p2705_p11), [#allocation7], 512   ;;  %p2706_p6 = pmov %p2705_p11 }
  0x5e   : > { %2218 = vsyncadd (%p2706_p6), [#allocation7], 4294966784  ;;  %p2707_p12 = pmov %p2706_p6 }
  0x5f   : > { %p2708_p1 = pmov %p2706_p6 }
  0x60   : > { %2220 = dma.done.wait (%p2707_p12), [#allocation10], 512  }
  0x61   : > { %2222 = vsyncadd (%p2708_p1), [#allocation10], 4294966784  ;;  %s159_s22 = sld [smem:[#allocation4 + %s2321_s1]]  ;;  %vm219_vm0 = vcmask 64512   ;;  %vm1528_vm1 = vcmask 7168   ;;  %vm1576_vm3 = vcmask 1040384  }
  0x62   : > { %s160_s5 = sld [smem:[#allocation5 + %s2321_s1]]  ;;  %s157_s8 = sand.u32 1, %s2233_s9  }
  0x63   : > { %s1682_s15 = sshll.u32 %s2321_s1, 4  ;;  %s158_s23 = scalar_lea.vmem [#allocation11], %s157_s8 }
  0x64   : > { %s1604_s25 = sshll.u32 %s158_s23, 4  ;;  %s2650_s21 = scalar_lea.hbm %s2695_s4, %s1682_s15  ;;  %s2652_s25 = int_to_ptr.vmem [resolvable:$true] %s1604_s25 }
  0x65   : > { %s1592_s29 = scalar_lea.sflag [#allocation8], %s157_s8  ;;  %s2169_s30 = scalar_lea.vmem %s2652_s25, 16 }
  0x66   : > { %p2170_p4 = scmp.ne.s32.totalorder %s2652_s25, %s2169_s30  ;;  %p2709_p2 = scmp.ne.s32.totalorder %s2700_s17, 0 }
  0x67   : > { %s1680_s24 = sshll.u32 %s159_s22, 3  ;;  %s2250_s1 = smov [#allocation11]  }
  0x68   : > { %s181_s6 = scalar_lea.vmem [#allocation6], %s1680_s24  ;;  %s1681_s19 = sshll.u32 %s160_s5, 3 }
  0x69   : > { %v182_v0 = vld [vmem:[%s181_s6] sm:$0xff]  ;;  %s185_s7 = scalar_lea.vmem [#allocation9], %s1681_s19  ;;  %p2171_p7 = pnand %p2170_p4, %p2709_p2 }
  0x6a   : > { %187 = vxpose.xlu0.b32.start.end [1/1] (short) %v182_v0, 128  ;;  %v186_v1 = vld [vmem:[%s185_s7] sm:$0xff]  ;;  %s2173_s22 = sshll.u32 %s2250_s1, 4  ;;  %s2174_s22 = int_to_ptr.vmem [resolvable:$false] %s2173_s22 }
  0x6b   : > { %v2422_v2 = vand.u32 4294901760, %v186_v1  ;;  %p2172_p8 = pneg %p2171_p7  ;;  %s2175_s5 = scalar_lea.vmem %s2174_s22, 32 }
  0x6c   : > { %p2176_p9 = scmp.lt.s32.totalorder %s2652_s25, %s2174_s22  ;;  %p2177_p10 = scmp.lt.s32.totalorder %s2175_s5, %s2169_s30 }
  0x6d   : > { %1865 = vmatprep.subr.mxu0 %v2422_v2  ;;  %1787 = vmatprep.subr.mxu1 %v2422_v2  ;;  %v2429_v3 = vsub.f32 %v186_v1, %v2422_v2 }
  0x6e   : > { %1866 = vmatpush3.msra.mxu0 %v2422_v2  ;;  %1788 = vmatpush3.msra.mxu1 %v2422_v2  ;;  %p2178_p13 = por %p2177_p10, %p2176_p9 }
  0x6f   : > { %v497_v4 = vand.u32 4294901760, %v2429_v3 }
  0x70   : > { %p2179_p0 = pnand %p2178_p13, %p2172_p8 }
  0x71   : > { %v498_v5 = vsub.f32 %v2429_v3, %v497_v4  ;;  %1891 = vmatprep.subr.mxu0 %v497_v4 }
  0x73   : > { %v499_v6 = vand.u32 4294901760, %v498_v5 }
  0x75   : > { %1813 = vmatprep.subr.mxu1 %v499_v6 }
  0xea   : > { %v203_v7 = vpop.trf.xlu0 }
  0xeb   : > { %v221_v8 = vsel %vm219_vm0, %v203_v7, 0 }
  0xec   : > { %v2434_v9 = vand.u32 4294901760, %v221_v8 }
  0xee   : > { %v2437_v10 = vsub.f32 %v221_v8, %v2434_v9  ;;  %v204_v11 = vpop.trf.xlu0 }
  0xef   : > { %v224_v12 = vsel %vm219_vm0, %v204_v11, 0 }
  0xf0   : > { %v2440_v13 = vand.u32 4294901760, %v224_v12  ;;  %v336_v14 = vand.u32 4294901760, %v2437_v10 }
  0xf2   : > { %v2444_v15 = vsub.f32 %v224_v12, %v2440_v13  ;;  %1867 = vmatprep.mubr.f32.mxu0 %v336_v14  ;;  %v205_v16 = vpop.trf.xlu0  ;;  %v337_v17 = vsub.f32 %v2437_v10, %v336_v14 }
  0xf3   : > { %v227_v18 = vsel %vm219_vm0, %v205_v16, 0 }
  0xf4   : > { %v2448_v19 = vand.u32 4294901760, %v227_v18  ;;  %v338_v20 = vand.u32 4294901760, %v337_v17  ;;  %v346_v21 = vand.u32 4294901760, %v2444_v15 }
  0xf6   : > { %v2452_v22 = vsub.f32 %v227_v18, %v2448_v19  ;;  %1789 = vmatprep.mubr.f32.mxu1 %v338_v20  ;;  %1868 = vmatmul.mubr.f32.vlgmr.msra.gmra.mrb[0].mxu0 %v346_v21  ;;  %v206_v23 = vpop.trf.xlu0  ;;  %v347_v24 = vsub.f32 %v2444_v15, %v346_v21 }
  0xf7   : > { %v230_v25 = vsel %vm219_vm0, %v206_v23, 0  ;;  %1892 = vmatpush3.msra.mxu0 %v497_v4 }
  0xf8   : > { %v2456_v26 = vand.u32 4294901760, %v230_v25  ;;  %v348_v27 = vand.u32 4294901760, %v347_v24  ;;  %v356_v28 = vand.u32 4294901760, %v2452_v22  ;;  %1917 = vmatprep.subr.mxu0 %v2422_v2 }
  0xfa   : > { %v2461_v29 = vsub.f32 %v230_v25, %v2456_v26  ;;  %1790 = vmatmul.mubr.f32.vlgmr.msra.gmra.mrb[0].mxu1 %v348_v27  ;;  %1870 = vmatprep.mubr.f32.mxu0 %v356_v28  ;;  %v207_v30 = vpop.trf.xlu0  ;;  %v357_v31 = vsub.f32 %v2452_v22, %v356_v28 }
  0xfb   : > { %v233_v32 = vsel %vm219_vm0, %v207_v30, 0  ;;  %1814 = vmatpush3.msra.mxu1 %v499_v6 }
  0xfc   : > { %v2465_v33 = vand.u32 4294901760, %v233_v32  ;;  %v358_v34 = vand.u32 4294901760, %v357_v31  ;;  %v366_v35 = vand.u32 4294901760, %v2461_v29  ;;  %1839 = vmatprep.subr.mxu1 %v2429_v3 }
  0xfe   : > { %v2470_v36 = vsub.f32 %v233_v32, %v2465_v33  ;;  %1792 = vmatprep.mubr.f32.mxu1 %v358_v34  ;;  %1871 = vmatmul.mubr.f32.gmra.mrb[2].mxu0 %v366_v35  ;;  %v208_v37 = vpop.trf.xlu0  ;;  %v367_v38 = vsub.f32 %v2461_v29, %v366_v35 }
  0xff   : > { %v236_v39 = vsel %vm219_vm0, %v208_v37, 0 }
 0x100   : > { %v2474_v40 = vand.u32 4294901760, %v236_v39  ;;  %v368_v41 = vand.u32 4294901760, %v367_v38  ;;  %v376_v42 = vand.u32 4294901760, %v2470_v36 }
 0x102   : > { %v2478_v43 = vsub.f32 %v236_v39, %v2474_v40  ;;  %1793 = vmatmul.mubr.f32.gmra.mrb[2].mxu1 %v368_v41  ;;  %1873 = vmatprep.mubr.f32.mxu0 %v376_v42  ;;  %v209_v44 = vpop.trf.xlu0  ;;  %v377_v45 = vsub.f32 %v2470_v36, %v376_v42 }
 0x103   : > { %v239_v46 = vsel %vm219_vm0, %v209_v44, 0 }
 0x104   : > { %v2482_v47 = vand.u32 4294901760, %v239_v46  ;;  %v378_v48 = vand.u32 4294901760, %v377_v45  ;;  %v386_v49 = vand.u32 4294901760, %v2478_v43 }
 0x106   : > { %v2486_v50 = vsub.f32 %v239_v46, %v2482_v47  ;;  %1795 = vmatprep.mubr.f32.mxu1 %v378_v48  ;;  %1874 = vmatmul.mubr.f32.gmra.mrb[4].mxu0 %v386_v49  ;;  %v210_v51 = vpop.trf.xlu0  ;;  %v387_v52 = vsub.f32 %v2478_v43, %v386_v49 }
 0x107   : > { %v242_v53 = vsel %vm219_vm0, %v210_v51, 0 }
 0x108   : > { %v2490_v54 = vand.u32 4294901760, %v242_v53  ;;  %v388_v55 = vand.u32 4294901760, %v387_v52  ;;  %v396_v56 = vand.u32 4294901760, %v2486_v50 }
 0x10a   : > { %v2494_v57 = vsub.f32 %v242_v53, %v2490_v54  ;;  %1796 = vmatmul.mubr.f32.gmra.mrb[4].mxu1 %v388_v55  ;;  %1876 = vmatprep.mubr.f32.mxu0 %v396_v56  ;;  %v211_v58 = vpop.trf.xlu0  ;;  %v397_v59 = vsub.f32 %v2486_v50, %v396_v56 }
 0x10b   : > { %v245_v60 = vsel %vm219_vm0, %v211_v58, 0 }
 0x10c   : > { %v2498_v61 = vand.u32 4294901760, %v245_v60  ;;  %v398_v62 = vand.u32 4294901760, %v397_v59  ;;  %v406_v63 = vand.u32 4294901760, %v2494_v57 }
 0x10e   : > { %v2502_v0 = vsub.f32 %v245_v60, %v2498_v61  ;;  %1798 = vmatprep.mubr.f32.mxu1 %v398_v62  ;;  %1877 = vmatmul.mubr.f32.gmra.mrb[6].mxu0 %v406_v63  ;;  %v212_v1 = vpop.trf.xlu0  ;;  %v407_v4 = vsub.f32 %v2494_v57, %v406_v63 }
 0x10f   : > { %v248_v5 = vsel %vm219_vm0, %v212_v1, 0 }
 0x110   : > { %v2506_v6 = vand.u32 4294901760, %v248_v5  ;;  %v408_v7 = vand.u32 4294901760, %v407_v4  ;;  %v416_v8 = vand.u32 4294901760, %v2502_v0 }
 0x112   : > { %v2510_v11 = vsub.f32 %v248_v5, %v2506_v6  ;;  %1799 = vmatmul.mubr.f32.gmra.mrb[6].mxu1 %v408_v7  ;;  %1879 = vmatprep.mubr.f32.mxu0 %v416_v8  ;;  %v213_v12 = vpop.trf.xlu0  ;;  %v417_v14 = vsub.f32 %v2502_v0, %v416_v8 }
 0x113   : > { %v251_v16 = vsel %vm219_vm0, %v213_v12, 0 }
 0x114   : > { %v2514_v17 = vand.u32 4294901760, %v251_v16  ;;  %v418_v18 = vand.u32 4294901760, %v417_v14  ;;  %v426_v20 = vand.u32 4294901760, %v2510_v11 }
 0x116   : > { %v2518_v21 = vsub.f32 %v251_v16, %v2514_v17  ;;  %1801 = vmatprep.mubr.f32.mxu1 %v418_v18  ;;  %1880 = vmatmul.mubr.f32.gmra.mrb[8].mxu0 %v426_v20  ;;  %v214_v23 = vpop.trf.xlu0  ;;  %v427_v24 = vsub.f32 %v2510_v11, %v426_v20 }
 0x117   : > { %v254_v25 = vsel %vm219_vm0, %v214_v23, 0 }
 0x118   : > { %v2522_v27 = vand.u32 4294901760, %v254_v25  ;;  %v428_v28 = vand.u32 4294901760, %v427_v24  ;;  %v436_v30 = vand.u32 4294901760, %v2518_v21 }
 0x11a   : > { %v2526_v31 = vsub.f32 %v254_v25, %v2522_v27  ;;  %1802 = vmatmul.mubr.f32.gmra.mrb[8].mxu1 %v428_v28  ;;  %1882 = vmatprep.mubr.f32.mxu0 %v436_v30  ;;  %v215_v32 = vpop.trf.xlu0  ;;  %v437_v34 = vsub.f32 %v2518_v21, %v436_v30 }
 0x11b   : > { %v257_v35 = vsel %vm219_vm0, %v215_v32, 0 }
 0x11c   : > { %v2530_v37 = vand.u32 4294901760, %v257_v35  ;;  %v438_v38 = vand.u32 4294901760, %v437_v34  ;;  %v446_v39 = vand.u32 4294901760, %v2526_v31 }
 0x11e   : > { %v2534_v41 = vsub.f32 %v257_v35, %v2530_v37  ;;  %1804 = vmatprep.mubr.f32.mxu1 %v438_v38  ;;  %1883 = vmatmul.mubr.f32.gmra.mrb[10].mxu0 %v446_v39  ;;  %v216_v42 = vpop.trf.xlu0  ;;  %v447_v44 = vsub.f32 %v2526_v31, %v446_v39 }
 0x11f   : > { %v260_v45 = vsel %vm219_vm0, %v216_v42, 0 }
 0x120   : > { %v2538_v46 = vand.u32 4294901760, %v260_v45  ;;  %v448_v48 = vand.u32 4294901760, %v447_v44  ;;  %v456_v49 = vand.u32 4294901760, %v2534_v41 }
 0x122   : > { %v2542_v51 = vsub.f32 %v260_v45, %v2538_v46  ;;  %1805 = vmatmul.mubr.f32.gmra.mrb[10].mxu1 %v448_v48  ;;  %1885 = vmatprep.mubr.f32.mxu0 %v456_v49  ;;  %v217_v52 = vpop.trf.xlu0  ;;  %v457_v53 = vsub.f32 %v2534_v41, %v456_v49 }
 0x123   : > { %v263_v55 = vsel %vm219_vm0, %v217_v52, 0 }
 0x124   : > { %v2546_v56 = vand.u32 4294901760, %v263_v55  ;;  %v458_v58 = vand.u32 4294901760, %v457_v53  ;;  %v466_v59 = vand.u32 4294901760, %v2542_v51 }
 0x126   : > { %v2550_v60 = vsub.f32 %v263_v55, %v2546_v56  ;;  %1807 = vmatprep.mubr.f32.mxu1 %v458_v58  ;;  %1886 = vmatmul.mubr.f32.gmra.mrb[12].mxu0 %v466_v59  ;;  %v218_v62 = vpop.trf.xlu0  ;;  %v467_v63 = vsub.f32 %v2542_v51, %v466_v59 }
 0x127   : > { %v266_v1 = vsel %vm219_vm0, %v218_v62, 0 }
 0x128   : > { %v2554_v4 = vand.u32 4294901760, %v266_v1  ;;  %v468_v5 = vand.u32 4294901760, %v467_v63  ;;  %v476_v7 = vand.u32 4294901760, %v2550_v60 }
 0x12a   : > { %v2558_v8 = vsub.f32 %v266_v1, %v2554_v4  ;;  %1808 = vmatmul.mubr.f32.gmra.mrb[12].mxu1 %v468_v5  ;;  %1888 = vmatprep.mubr.f32.mxu0 %v476_v7  ;;  %v477_v12 = vsub.f32 %v2550_v60, %v476_v7 }
 0x12c   : > { %v478_v14 = vand.u32 4294901760, %v477_v12  ;;  %v486_v16 = vand.u32 4294901760, %v2558_v8 }
 0x12e   : > { %1810 = vmatprep.mubr.f32.mxu1 %v478_v14  ;;  %1889 = vmatmul.mubr.f32.gmra.mrb[14].mxu0 %v486_v16  ;;  %v487_v18 = vsub.f32 %v2558_v8, %v486_v16 }
 0x12f   : > { %1893 = vmatprep.mubr.f32.mxu0 %v2434_v9 }
 0x130   : > { %v488_v20 = vand.u32 4294901760, %v487_v18 }
 0x132   : > { %1811 = vmatmul.mubr.f32.gmra.mrb[14].mxu1 %v488_v20  ;;  %1894 = vmatmul.mubr.f32.vlgmr.msra.gmra.mrb[0].mxu0 %v2440_v13 }
 0x133   : > { %1815 = vmatprep.mubr.f32.mxu1 %v2434_v9  ;;  %1896 = vmatprep.mubr.f32.mxu0 %v2448_v19 }
 0x134   : > { %1918 = vmatpush3.msra.mxu0 %v2422_v2  ;;  %v2249_v2 = vmov 3e+38  }
 0x135   : > { %161 = vst [vmem:[#allocation2] sm:$0x1] %v2249_v2 }
 0x136   : > { %1816 = vmatmul.mubr.f32.vlgmr.msra.gmra.mrb[0].mxu1 %v2440_v13  ;;  %1897 = vmatmul.mubr.f32.gmra.mrb[2].mxu0 %v2456_v26 }
 0x137   : > { %1840 = vmatpush3.msra.mxu1 %v2429_v3  ;;  %1818 = vmatprep.mubr.f32.mxu1 %v2448_v19 }
 0x138   : > { %1899 = vmatprep.mubr.f32.mxu0 %v2465_v33 }
 0x13a   : > { %1819 = vmatmul.mubr.f32.gmra.mrb[2].mxu1 %v2456_v26  ;;  %1900 = vmatmul.mubr.f32.gmra.mrb[4].mxu0 %v2474_v40 }
 0x13b   : > { %1821 = vmatprep.mubr.f32.mxu1 %v2465_v33  ;;  %1902 = vmatprep.mubr.f32.mxu0 %v2482_v47 }
 0x13e   : > { %1822 = vmatmul.mubr.f32.gmra.mrb[4].mxu1 %v2474_v40  ;;  %1903 = vmatmul.mubr.f32.gmra.mrb[6].mxu0 %v2490_v54 }
 0x13f   : > { %1824 = vmatprep.mubr.f32.mxu1 %v2482_v47  ;;  %1905 = vmatprep.mubr.f32.mxu0 %v2498_v61 }
 0x142   : > { %1825 = vmatmul.mubr.f32.gmra.mrb[6].mxu1 %v2490_v54  ;;  %1906 = vmatmul.mubr.f32.gmra.mrb[8].mxu0 %v2506_v6 }
 0x143   : > { %1827 = vmatprep.mubr.f32.mxu1 %v2498_v61  ;;  %1908 = vmatprep.mubr.f32.mxu0 %v2514_v17 }
 0x146   : > { %1828 = vmatmul.mubr.f32.gmra.mrb[8].mxu1 %v2506_v6  ;;  %1909 = vmatmul.mubr.f32.gmra.mrb[10].mxu0 %v2522_v27 }
 0x147   : > { %1830 = vmatprep.mubr.f32.mxu1 %v2514_v17  ;;  %1911 = vmatprep.mubr.f32.mxu0 %v2530_v37 }
 0x14a   : > { %1831 = vmatmul.mubr.f32.gmra.mrb[10].mxu1 %v2522_v27  ;;  %1912 = vmatmul.mubr.f32.gmra.mrb[12].mxu0 %v2538_v46 }
 0x14b   : > { %1833 = vmatprep.mubr.f32.mxu1 %v2530_v37  ;;  %1914 = vmatprep.mubr.f32.mxu0 %v2546_v56 }
 0x14e   : > { %1834 = vmatmul.mubr.f32.gmra.mrb[12].mxu1 %v2538_v46  ;;  %1915 = vmatmul.mubr.f32.gmra.mrb[14].mxu0 %v2554_v4 }
 0x14f   : > { %1836 = vmatprep.mubr.f32.mxu1 %v2546_v56  ;;  %1919 = vmatprep.mubr.f32.mxu0 %v2434_v9 }
 0x152   : > { %1837 = vmatmul.mubr.f32.gmra.mrb[14].mxu1 %v2554_v4  ;;  %1920 = vmatmul.mubr.f32.vlgmr.msra.gmra.mrb[0].mxu0 %v2440_v13 }
 0x153   : > { %1841 = vmatprep.mubr.f32.mxu1 %v2437_v10  ;;  %1922 = vmatprep.mubr.f32.mxu0 %v2448_v19 }
 0x156   : > { %1842 = vmatmul.mubr.f32.vlgmr.msra.gmra.mrb[0].mxu1 %v2444_v15  ;;  %1923 = vmatmul.mubr.f32.gmra.mrb[2].mxu0 %v2456_v26 }
 0x157   : > { %1844 = vmatprep.mubr.f32.mxu1 %v2452_v22  ;;  %1925 = vmatprep.mubr.f32.mxu0 %v2465_v33 }
 0x15a   : > { %1845 = vmatmul.mubr.f32.gmra.mrb[2].mxu1 %v2461_v29  ;;  %1926 = vmatmul.mubr.f32.gmra.mrb[4].mxu0 %v2474_v40 }
 0x15b   : > { %1847 = vmatprep.mubr.f32.mxu1 %v2470_v36  ;;  %1928 = vmatprep.mubr.f32.mxu0 %v2482_v47 }
 0x15e   : > { %1848 = vmatmul.mubr.f32.gmra.mrb[4].mxu1 %v2478_v43  ;;  %1929 = vmatmul.mubr.f32.gmra.mrb[6].mxu0 %v2490_v54 }
 0x15f   : > { %1850 = vmatprep.mubr.f32.mxu1 %v2486_v50  ;;  %1931 = vmatprep.mubr.f32.mxu0 %v2498_v61 }
 0x162   : > { %1851 = vmatmul.mubr.f32.gmra.mrb[6].mxu1 %v2494_v57  ;;  %1932 = vmatmul.mubr.f32.gmra.mrb[8].mxu0 %v2506_v6 }
 0x163   : > { %1853 = vmatprep.mubr.f32.mxu1 %v2502_v0  ;;  %1934 = vmatprep.mubr.f32.mxu0 %v2514_v17 }
 0x166   : > { %1854 = vmatmul.mubr.f32.gmra.mrb[8].mxu1 %v2510_v11  ;;  %1935 = vmatmul.mubr.f32.gmra.mrb[10].mxu0 %v2522_v27 }
 0x167   : > { %1856 = vmatprep.mubr.f32.mxu1 %v2518_v21  ;;  %1937 = vmatprep.mubr.f32.mxu0 %v2530_v37 }
 0x16a   : > { %1857 = vmatmul.mubr.f32.gmra.mrb[10].mxu1 %v2526_v31  ;;  %1938 = vmatmul.mubr.f32.gmra.mrb[12].mxu0 %v2538_v46 }
 0x16b   : > { %1859 = vmatprep.mubr.f32.mxu1 %v2534_v41  ;;  %1940 = vmatprep.mubr.f32.mxu0 %v2546_v56 }
 0x16e   : > { %1860 = vmatmul.mubr.f32.gmra.mrb[12].mxu1 %v2542_v51  ;;  %1941 = vmatmul.mubr.f32.gmra.mrb[14].mxu0 %v2554_v4 }
 0x16f   : > { %1862 = vmatprep.mubr.f32.mxu1 %v2550_v60 }
 0x172   : > { %1863 = vmatmul.mubr.f32.gmra.mrb[14].mxu1 %v2558_v8 }
 0x225   : > { %v1921_v3 = vpop.f32.mrb[0].mxu0 }
 0x226   : > { %v1265_v9 = vpop.f32.mrb[1].mxu0 }
 0x229   : > { %v1843_v10 = vpop.f32.mrb[0].mxu1  ;;  %v1924_v13 = vpop.f32.mrb[2].mxu0 }
 0x22a   : > { %v1943_v15 = vadd.f32 %v1921_v3, %v1843_v10  ;;  %v730_v19 = vpop.f32.mrb[1].mxu1  ;;  %v1277_v22 = vpop.f32.mrb[3].mxu0 }
 0x22b   : > { %v1944_v26 = vadd.f32 %v1265_v9, %v730_v19 }
 0x22c   : > { %v1360_v29 = vmin.f32 %v1943_v15, 3e+38 }
 0x22d   : > { %v1846_v33 = vpop.f32.mrb[2].mxu1  ;;  %v1927_v36 = vpop.f32.mrb[4].mxu0  ;;  %v1359_v40 = vmin.f32 %v1944_v26, 3e+38 }
 0x22e   : > { %v1945_v43 = vadd.f32 %v1924_v13, %v1846_v33  ;;  %v1289_v47 = vpop.f32.mrb[5].mxu0  ;;  %1401 = vmin.xlane.f32.xlu1 %v1360_v29  ;;  %v744_v50 = vpop.f32.mrb[3].mxu1 }
 0x22f   : > { %v1946_v54 = vadd.f32 %v1277_v22, %v744_v50  ;;  %1399 = vmin.xlane.f32.xlu0 %v1359_v40 }
 0x230   : > { %v1362_v57 = vmin.f32 %v1945_v43, 3e+38 }
 0x231   : > { %v1849_v61 = vpop.f32.mrb[4].mxu1  ;;  %v1930_v0 = vpop.f32.mrb[6].mxu0  ;;  %v1361_v24 = vmin.f32 %v1946_v54, 3e+38 }
 0x232   : > { %v1947_v6 = vadd.f32 %v1927_v36, %v1849_v61  ;;  %v1301_v11 = vpop.f32.mrb[7].mxu0  ;;  %1405 = vmin.xlane.f32.xlu1 %v1362_v57  ;;  %v758_v17 = vpop.f32.mrb[5].mxu1  ;;  %v1396_v57 = vld [vmem:[#allocation2] sm:$0x1] }
 0x233   : > { %v1948_v21 = vadd.f32 %v1289_v47, %v758_v17 }
 0x234   : > { %v1376_v23 = vmin.f32 %v1943_v15, %v1947_v6  ;;  %v1364_v37 = vmin.f32 %v1947_v6, 3e+38 }
 0x235   : > { %v1375_v25 = vmin.f32 %v1944_v26, %v1948_v21  ;;  %v1852_v27 = vpop.f32.mrb[6].mxu1  ;;  %v1933_v28 = vpop.f32.mrb[8].mxu0  ;;  %v1363_v49 = vmin.f32 %v1948_v21, 3e+38 }
 0x236   : > { %v1949_v30 = vadd.f32 %v1930_v0, %v1852_v27  ;;  %v1313_v31 = vpop.f32.mrb[9].mxu0  ;;  %1403 = vmin.xlane.f32.xlu1 %v1361_v24  ;;  %v772_v32 = vpop.f32.mrb[7].mxu1 }
 0x237   : > { %v1950_v34 = vadd.f32 %v1301_v11, %v772_v32 }
 0x238   : > { %v1378_v35 = vmin.f32 %v1945_v43, %v1949_v30  ;;  %v1366_v62 = vmin.f32 %v1949_v30, 3e+38 }
 0x239   : > { %v1377_v38 = vmin.f32 %v1946_v54, %v1950_v34  ;;  %v1855_v39 = vpop.f32.mrb[8].mxu1  ;;  %v1936_v41 = vpop.f32.mrb[10].mxu0  ;;  %v1365_v16 = vmin.f32 %v1950_v34, 3e+38 }
 0x23a   : > { %v1951_v42 = vadd.f32 %v1933_v28, %v1855_v39  ;;  %v1325_v44 = vpop.f32.mrb[11].mxu0  ;;  %1409 = vmin.xlane.f32.xlu1 %v1364_v37  ;;  %v786_v45 = vpop.f32.mrb[9].mxu1 }
 0x23b   : > { %v1952_v46 = vadd.f32 %v1313_v31, %v786_v45 }
 0x23c   : > { %v1380_v48 = vmin.f32 %v1376_v23, %v1951_v42  ;;  %v1368_v15 = vmin.f32 %v1951_v42, 3e+38 }
 0x23d   : > { %v1379_v51 = vmin.f32 %v1375_v25, %v1952_v46  ;;  %v1858_v52 = vpop.f32.mrb[10].mxu1  ;;  %v1939_v53 = vpop.f32.mrb[12].mxu0  ;;  %v1367_v26 = vmin.f32 %v1952_v46, 3e+38 }
 0x23e   : > { %v1953_v55 = vadd.f32 %v1936_v41, %v1858_v52  ;;  %v1337_v56 = vpop.f32.mrb[13].mxu0  ;;  %1407 = vmin.xlane.f32.xlu1 %v1363_v49  ;;  %v800_v58 = vpop.f32.mrb[11].mxu1 }
 0x23f   : > { %v1954_v59 = vadd.f32 %v1325_v44, %v800_v58 }
 0x240   : > { %v1382_v60 = vmin.f32 %v1378_v35, %v1953_v55  ;;  %v1370_v36 = vmin.f32 %v1953_v55, 3e+38 }
 0x241   : > { %v1381_v63 = vmin.f32 %v1377_v38, %v1954_v59  ;;  %v1861_v1 = vpop.f32.mrb[12].mxu1  ;;  %v1942_v4 = vpop.f32.mrb[14].mxu0  ;;  %v1369_v47 = vmin.f32 %v1954_v59, 3e+38 }
 0x242   : > { %v1955_v5 = vadd.f32 %v1939_v53, %v1861_v1  ;;  %v1349_v7 = vpop.f32.mrb[15].mxu0  ;;  %1413 = vmin.xlane.f32.xlu1 %v1366_v62  ;;  %v814_v8 = vpop.f32.mrb[13].mxu1 }
 0x243   : > { %v1956_v12 = vadd.f32 %v1337_v56, %v814_v8 }
 0x244   : > { %v1384_v14 = vmin.f32 %v1380_v48, %v1955_v5  ;;  %v1372_v61 = vmin.f32 %v1955_v5, 3e+38 }
 0x245   : > { %v1383_v18 = vmin.f32 %v1379_v51, %v1956_v12  ;;  %v1864_v20 = vpop.f32.mrb[14].mxu1  ;;  %v1371_v11 = vmin.f32 %v1956_v12, 3e+38 }
 0x246   : > { %v1957_v2 = vadd.f32 %v1942_v4, %v1864_v20  ;;  %1411 = vmin.xlane.f32.xlu1 %v1365_v16  ;;  %v828_v3 = vpop.f32.mrb[15].mxu1 }
 0x247   : > { %v1387_v9 = vmin.f32 %v1383_v18, %v1384_v14  ;;  %v1958_v10 = vadd.f32 %v1349_v7, %v828_v3 }
 0x248   : > { %v1386_v13 = vmin.f32 %v1382_v60, %v1957_v2  ;;  %v1374_v21 = vmin.f32 %v1957_v2, 3e+38 }
 0x249   : > { %v1385_v19 = vmin.f32 %v1381_v63, %v1958_v10  ;;  %v1373_v17 = vmin.f32 %v1958_v10, 3e+38 }
 0x24a   : > { %1417 = vmin.xlane.f32.xlu1 %v1368_v15 }
 0x24b   : > { %v1388_v22 = vmin.f32 %v1385_v19, %v1386_v13 }
 0x24d   : > { %v1389_v29 = vmin.f32 %v1387_v9, %v1388_v22 }
 0x24e   : > { %1415 = vmin.xlane.f32.xlu1 %v1367_v26 }
 0x24f   : > { %v1390_v33 = vrot.slane %v1389_v29, 4 }
 0x251   : > { %v1391_v40 = vmin.f32 %v1389_v29, %v1390_v33 }
 0x252   : > { %1421 = vmin.xlane.f32.xlu1 %v1370_v36 }
 0x253   : > { %v1392_v43 = vrot.slane %v1391_v40, 2 }
 0x255   : > { %v1393_v50 = vmin.f32 %v1391_v40, %v1392_v43 }
 0x256   : > { %1419 = vmin.xlane.f32.xlu1 %v1369_v47 }
 0x257   : > { %v1394_v54 = vrot.slane %v1393_v50, 1 }
 0x259   : > { %v1395_v0 = vmin.f32 %v1393_v50, %v1394_v54 }
 0x25a   : > { %1425 = vmin.xlane.f32.xlu1 %v1372_v61 }
 0x25b   : > { %v1397_v6 = vmin.f32 %v1396_v57, %v1395_v0 }
 0x25d   : > { %1398 = vst [vmem:[#allocation2] sm:$0x1] %v1397_v6 }
 0x25e   : > { %1423 = vmin.xlane.f32.xlu1 %v1371_v11 }
 0x262   : > { %1427 = vmin.xlane.f32.xlu1 %v1373_v17 }
 0x266   : > { %1429 = vmin.xlane.f32.xlu1 %v1374_v21 }
 0x2bb   : > { %v1402_v23 = vpop.xlane.xlu1 %1401 }
 0x2bc   : > { %v1400_v27 = vpop.xlane.xlu0 %1399  ;;  %v1432_v31 = vmax.f32 %v1402_v23, 0.0 }
 0x2bd   : > { %v1431_v32 = vmax.f32 %v1400_v27, 0.0 }
 0x2be   : > { %v1530_v37 = vsel %vm1528_vm1, %v1432_v31, 0.0 }
 0x2bf   : > { %v1406_v24 = vpop.xlane.xlu1 %1405  ;;  %v1529_v38 = vsel %vm1528_vm1, %v1431_v32, 0.0 }
 0x2c0   : > { %v1434_v39 = vmax.f32 %v1406_v24, 0.0  ;;  %v1531_v45 = vadd.f32 %v1530_v37, %v1529_v38  ;;  %v1570_v37 = vld [vmem:[#allocation2] sm:$0x1] }
 0x2c2   : > { %v1515_v46 = vmul.f32 0.0, %v1434_v39 }
 0x2c3   : > { %v1404_v25 = vpop.xlane.xlu1 %1403 }
 0x2c4   : > { %v1433_v30 = vmax.f32 %v1404_v25, 0.0  ;;  %v1534_v55 = vsel %vm1528_vm1, %v1515_v46, 0.0  ;;  %v1572_v25 = vlaneseq }
 0x2c6   : > { %v1514_v35 = vmul.f32 0.0, %v1433_v30  ;;  %v1573_v38 = vand.u32 127, %v1572_v25 }
 0x2c7   : > { %v1410_v28 = vpop.xlane.xlu1 %1409 }
 0x2c8   : > { %v1532_v44 = vsel %vm1528_vm1, %v1514_v35, 0.0  ;;  %v1436_v52 = vmax.f32 %v1410_v28, 0.0  ;;  %vm1574_vm2 = vcmp.lt.s32.totalorder %v1573_v38, 16 }
 0x2c9   : > { %v1533_v49 = vadd.f32 %v1532_v44, %v1531_v45 }
 0x2ca   : > { %v1517_v60 = vmul.f32 0.0, %v1436_v52 }
 0x2cb   : > { %v1408_v34 = vpop.xlane.xlu1 %1407  ;;  %v1535_v58 = vadd.f32 %v1534_v55, %v1533_v49 }
 0x2cc   : > { %v1435_v41 = vmax.f32 %v1408_v34, 0.0  ;;  %v1538_v5 = vsel %vm1528_vm1, %v1517_v60, 0.0 }
 0x2ce   : > { %v1516_v48 = vmul.f32 0.0, %v1435_v41 }
 0x2cf   : > { %v1414_v42 = vpop.xlane.xlu1 %1413 }
 0x2d0   : > { %v1536_v56 = vsel %vm1528_vm1, %v1516_v48, 0.0  ;;  %v1438_v1 = vmax.f32 %v1414_v42, 0.0  ;;  %v1571_v42 = vmax.f32 %v1570_v37, 0.0 }
 0x2d1   : > { %v1537_v63 = vadd.f32 %v1536_v56, %v1535_v58 }
 0x2d2   : > { %v1519_v14 = vmul.f32 0.0, %v1438_v1  ;;  %v1575_v46 = vsel %vm1574_vm2, %v1571_v42, 0.0 }
 0x2d3   : > { %v1412_v51 = vpop.xlane.xlu1 %1411  ;;  %v1539_v12 = vadd.f32 %v1538_v5, %v1537_v63  ;;  %v1577_v48 = vsel %vm1576_vm3, %v1575_v46, 0.0 }
 0x2d4   : > { %v1437_v53 = vmax.f32 %v1412_v51, 0.0  ;;  %v1542_v3 = vsel %vm1528_vm1, %v1519_v14, 0.0 }
 0x2d6   : > { %v1518_v62 = vmul.f32 0.0, %v1437_v53 }
 0x2d7   : > { %v1418_v59 = vpop.xlane.xlu1 %1417 }
 0x2d8   : > { %v1540_v7 = vsel %vm1528_vm1, %v1518_v62, 0.0  ;;  %v1440_v2 = vmax.f32 %v1418_v59, 0.0 }
 0x2d9   : > { %v1541_v18 = vadd.f32 %v1540_v7, %v1539_v12 }
 0x2da   : > { %v1521_v15 = vmul.f32 0.0, %v1440_v2 }
 0x2db   : > { %v1416_v4 = vpop.xlane.xlu1 %1415  ;;  %v1543_v10 = vadd.f32 %v1542_v3, %v1541_v18 }
 0x2dc   : > { %v1439_v8 = vmax.f32 %v1416_v4, 0.0  ;;  %v1546_v36 = vsel %vm1528_vm1, %v1521_v15, 0.0 }
 0x2de   : > { %v1520_v16 = vmul.f32 0.0, %v1439_v8 }
 0x2df   : > { %v1422_v20 = vpop.xlane.xlu1 %1421 }
 0x2e0   : > { %v1544_v9 = vsel %vm1528_vm1, %v1520_v16, 0.0  ;;  %v1442_v26 = vmax.f32 %v1422_v20, 0.0 }
 0x2e1   : > { %v1545_v22 = vadd.f32 %v1544_v9, %v1543_v10 }
 0x2e2   : > { %v1523_v47 = vmul.f32 0.0, %v1442_v26 }
 0x2e3   : > { %v1420_v13 = vpop.xlane.xlu1 %1419  ;;  %v1547_v43 = vadd.f32 %v1546_v36, %v1545_v22 }
 0x2e4   : > { %v1441_v19 = vmax.f32 %v1420_v13, 0.0  ;;  %v1550_v0 = vsel %vm1528_vm1, %v1523_v47, 0.0 }
 0x2e6   : > { %v1522_v29 = vmul.f32 0.0, %v1441_v19 }
 0x2e7   : > { %v1426_v33 = vpop.xlane.xlu1 %1425 }
 0x2e8   : > { %v1548_v40 = vsel %vm1528_vm1, %v1522_v29, 0.0  ;;  %v1444_v50 = vmax.f32 %v1426_v33, 0.0 }
 0x2e9   : > { %v1549_v54 = vadd.f32 %v1548_v40, %v1547_v43 }
 0x2ea   : > { %v1525_v6 = vmul.f32 0.0, %v1444_v50 }
 0x2eb   : > { %v1424_v57 = vpop.xlane.xlu1 %1423  ;;  %v1551_v17 = vadd.f32 %v1550_v0, %v1549_v54 }
 0x2ec   : > { %v1443_v61 = vmax.f32 %v1424_v57, 0.0  ;;  %v1554_v28 = vsel %vm1528_vm1, %v1525_v6, 0.0 }
 0x2ee   : > { %v1524_v11 = vmul.f32 0.0, %v1443_v61 }
 0x2ef   : > { %v1428_v21 = vpop.xlane.xlu1 %1427 }
 0x2f0   : > { %v1552_v23 = vsel %vm1528_vm1, %v1524_v11, 0.0  ;;  %v1445_v24 = vmax.f32 %v1428_v21, 0.0 }
 0x2f1   : > { %v1553_v27 = vadd.f32 %v1552_v23, %v1551_v17 }
 0x2f2   : > { %v1526_v30 = vmul.f32 0.0, %v1445_v24 }
 0x2f3   : > { %v1430_v31 = vpop.xlane.xlu1 %1429  ;;  %v1555_v32 = vadd.f32 %v1554_v28, %v1553_v27 }
 0x2f4   : > { %v1556_v34 = vsel %vm1528_vm1, %v1526_v30, 0.0  ;;  %v1446_v35 = vmax.f32 %v1430_v31, 0.0 }
 0x2f5   : > { %v1557_v41 = vadd.f32 %v1556_v34, %v1555_v32 }
 0x2f6   : > { %v1527_v39 = vmul.f32 0.0, %v1446_v35 }
 0x2f8   : > { %v1558_v44 = vsel %vm1528_vm1, %v1527_v39, 0.0 }
 0x2f9   : > { %v1559_v45 = vadd.f32 %v1558_v44, %v1557_v41 }
 0x2fb   : > { %1560 = vadd.xlane.f32.xlu1 %v1559_v45 }
 0x2ff   : > { %1578 = vadd.xlane.f32.xlu1 %v1577_v48 }
 0x388   : > { %v1561_v49 = vpop.xlane.xlu1 %1560 }
 0x389   : > { %v1562_v51 = vrot.slane %v1561_v49, 4 }
 0x38b   : > { %v1563_v52 = vadd.f32 %v1562_v51, %v1561_v49 }
 0x38c   : > { %v1579_v53 = vpop.xlane.xlu1 %1578 }
 0x38d   : > { %v1564_v55 = vrot.slane %v1563_v52, 2  ;;  %v1580_v56 = vrot.slane %v1579_v53, 4 }
 0x38f   : > { %v1581_v58 = vadd.f32 %v1580_v56, %v1579_v53  ;;  %v1565_v59 = vadd.f32 %v1564_v55, %v1563_v52 }
 0x391   : > { %v1582_v60 = vrot.slane %v1581_v58, 2  ;;  %v1566_v62 = vrot.slane %v1565_v59, 1 }
 0x393   : > { %v1583_v63 = vadd.f32 %v1582_v60, %v1581_v58  ;;  %v1567_v1 = vadd.f32 %v1566_v62, %v1565_v59 }
 0x395   : > { %2023 = vpush %v1567_v1  ;;  %v1584_v4 = vrot.slane %v1583_v63, 1 }
 0x397   : > { %v1585_v5 = vadd.f32 %v1584_v4, %v1583_v63 }
 0x399   : > { %2025 = vpush %v1585_v5 }
 0x3c6   : > { %s2024_s12 = spop %2023 }
 0x3ca   : > { %s2026_s14 = spop %2025 }
 0x3cb   : > { %s1587_s20 = sadd.f32 %s2026_s14, %s2024_s12 }
 0x3cd   : > { %s1588_s26 = smul.f32 0.0625, %s1587_s20 }
 0x3cf   : > { %v1589_v7 = vstv %s1588_s26 }
 0x3d0   : > { %1590 = vst [vmem:[%s158_s23] sm:$0x1] %v1589_v7 }
 0x3d1   : > { %2182 = shalt.err (!%p2179_p0)
}
 0x3d2   : > { %s2183_s24 = scalar_lea.hbm %s2650_s21, 16  ;;  %s2187_s7 = scalar_lea.hbm %s2695_s4, 96 }
 0x3d3   : > { %p2184_p3 = scmp.ne.s32.totalorder %s2650_s21, %s2183_s24  ;;  %p2188_p6 = scmp.lt.u32.totalorder %s2650_s21, %s2695_s4 }
 0x3d4   : > { %p2189_p12 = scmp.lt.u32.totalorder %s2187_s7, %s2183_s24  ;;  %p2191_p4 = scmp.lt.u32.totalorder %s2183_s24, %s2650_s21 }
 0x3d5   : > { %p2185_p5 = pnand %p2184_p3, %p2709_p2 }
 0x3d6   : > { %p2190_p1 = por %p2189_p12, %p2188_p6 }
 0x3d7   : > { %p2186_p11 = pneg %p2185_p5 }
 0x3d8   : > { %p2192_p7 = por %p2191_p4, %p2190_p1 }
 0x3da   : > { %p2193_p8 = pnand %p2192_p7, %p2186_p11 }
 0x3dc   : > { %2196 = shalt.err (!%p2193_p8)
}
 0x3dd   : > { %2035 = dma.vmem_to_hbm [thread:$0]  (%p2709_p2), %s2652_s25, 16, %s2650_s21, %s1592_s29  }
 0x3de PF: > { %p2052_p9 = scmp.ge.s32.totalorder %s2241_s11, 2  ;;  %s1616_s14 = sand.u32 1, %s2229_s0  }
 0x3df   : > { %p2710_p10 = scmp.ne.s32.totalorder %s2701_s18, 0  ;;  %s1617_s15 = scalar_lea.sflag [#allocation8], %s1616_s14 }
 0x3e1   : > { %p2045_p13 = pnand %p2052_p9, %p2710_p10 }
 0x3e3   : > { %2224 = dma.done.wait (!%p2045_p13), %s1617_s15, 16  }
 0x3e4   : > { %2226 = vsyncadd (!%p2045_p13), %s1617_s15, 4294967280  ;;  %p22_p0 = scmp.ge.s32.totalorder %s2325_s13, 8   ;;  %s2711_s0 = smov %s2233_s9 }
 0x3e5   : > { %s2712_s9 = smov %s2237_s10  ;;  %s2713_s10 = smov %s2336_s16 }
 0x3e6   : > { %s2714_s11 = smov %s2325_s13  ;;  %24 = sbr.rel (!%p22_p0) target bundleno = 24 (0x18), region = 71 }
 0x3ed   :  { %1621 = vsyncpa [#allocation7], 1 }
 0x3ee   :  { %1623 = vsyncpa [#allocation7 + $0x1], 1 }
 0x3ef   :  { %1624 = vsyncpa [#allocation10], 1 }
 0x3f0   :  { %1625 = vsyncpa [#allocation8], 1 }
 0x3f1   :  { %1627 = vsyncpa [#allocation8 + $0x1], 1 }

</bundles_post_ra>
